<compile_context>
chip_gen: v5e
topology: v5e:2x2
jax: 0.10.0
libtpu: 0.0.40
codegen_flags: <defaults>
</compile_context>

<pallas_src>
import jax
import jax.numpy as jnp
import numpy as np
from jax.experimental import pallas as pl
from jax.experimental.pallas import tpu as pltpu

# ---------------- configuration (consistent with the module) -----------------
ENC_IN = 24            # forced by the `24` hardcoded in forward()
SEQ_LEN = 8
FEATURE_NUM = 4        # f_size == feature_num
HIDDEN_DIMS = (32, 32)
OUTPUT_DIM = 4
L = 24 * FEATURE_NUM   # conv spatial length / flattened stats cols (96)
X_COLS = SEQ_LEN * L   # 768 flattened series cols (multiple of 128 -> lane dense)

# packed resident weight buffer layout (all slice starts 8-aligned)
W1X_ROWS = X_COLS              # 768  fused reflect-conv + feature_concentration
W1S_START = W1X_ROWS           # 768  feature_concentration over stats
BIAS_START = W1S_START + L     # 864  rows: [fc_b | b0 | b1 | 0...]
W2_START = BIAS_START + 8      # 872  backbone layer 0
W3_START = W2_START + 128      # 1000 backbone layer 1
W4_START = W3_START + 128      # 1128 final projection (no bias)
PACKED_ROWS = W4_START + 128   # 1256

MAX_BLOCK_ROWS = 2048          # review: 1024-2048; 2048 keeps VMEM ~16-18 MiB


def _round_up(n, m):
    return (n + m - 1) // m * m


# ------------------------------- Pallas kernel -------------------------------
def projectorh_kernel(x_ref, s_ref, w_ref, o_ref):
    # x_ref: (B_blk, 768)  flattened series (input dtype, cast in-kernel)
    # s_ref: (B_blk, 96)   flattened stats
    # w_ref: (1256, 128)   packed [W1x | W1s | bias rows | W2 | W3 | W4]
    # o_ref: (B_blk, 128)  lane-dense output, cols 0:4 are the result
    cdt = w_ref.dtype          # MXU operand dtype (bf16 by default)
    f32 = jnp.float32

    w1x = w_ref[0:W1X_ROWS, :]                        # fused reflect-conv + fc
    w1s = w_ref[W1S_START:BIAS_START, :]              # fc over stats
    bias = w_ref[BIAS_START:W2_START, :].astype(f32)  # rows 0..2: fc_b, b0, b1
    w2 = w_ref[W2_START:W3_START, :]
    w3 = w_ref[W3_START:W4_START, :]
    w4 = w_ref[W4_START:PACKED_ROWS, :]

    # stage 1: conv path (cols 0:24) + stats path (cols 24:48) + fc bias + ReLU
    h = jnp.dot(x_ref[...].astype(cdt), w1x, preferred_element_type=f32)
    h = h + jnp.dot(s_ref[...].astype(cdt), w1s, preferred_element_type=f32)
    h = jnp.maximum(h + bias[0:1, :], 0.0)
    # stages 2-3: backbone hidden layers (operands in cdt, f32 accumulation;
    # h itself stays f32 between layers)
    h = jnp.maximum(
        jnp.dot(h.astype(cdt), w2, preferred_element_type=f32) + bias[1:2, :], 0.0)
    h = jnp.maximum(
        jnp.dot(h.astype(cdt), w3, preferred_element_type=f32) + bias[2:3, :], 0.0)
    # stage 4: final projection (no bias); lane-dense store
    o_ref[...] = jnp.dot(h.astype(cdt), w4,
                         preferred_element_type=f32).astype(o_ref.dtype)


# ----------------------------- parameter packing ------------------------------
def pack_params(params, dtype):
    """Fold Conv1d (incl. reflect padding), feature_concentration, the
    conv/stats concat and the backbone into one (1256, 128) buffer."""
    f32 = jnp.float32
    cw = params["conv_w"].astype(f32)            # (S, 3)  Conv1d weight[0]
    fcw = params["fc_w"].astype(f32)             # (F,)
    fcb = params["fc_b"].astype(f32)             # (1,)

    # block-diagonal expansion of Linear(F, 1) over the 24 groups: (L, 24)
    wbig = jnp.kron(jnp.eye(24, dtype=f32), fcw.reshape(FEATURE_NUM, 1))

    # reflect-pad fold: P[i, p] = 1 iff padded position p reads unpadded col i
    P = np.zeros((L, L + 2), np.float32)
    P[1, 0] = 1.0
    P[np.arange(L), np.arange(1, L + 1)] = 1.0
    P[L - 2, L + 1] = 1.0
    P = jnp.asarray(P)
    # M_k[i, j] = sum_m P[i, m+k] * wbig[m, j]  (tap-k contribution of x_i)
    Mk = jnp.stack([P[:, k:k + L] @ wbig for k in range(3)])      # (3, L, 24)
    # W1x[s*L + i, j] = sum_k cw[s, k] * M_k[i, j]
    w1x = jnp.einsum("sk,kij->sij", cw, Mk).reshape(SEQ_LEN * L, 24)

    W1x = jnp.zeros((W1X_ROWS, 128), f32).at[:, 0:24].set(w1x)
    W1s = jnp.zeros((L, 128), f32).at[:, 24:48].set(wbig)

    Bias = jnp.zeros((8, 128), f32)
    Bias = Bias.at[0, 0:48].set(fcb[0])                            # fc bias
    Bias = Bias.at[1, 0:HIDDEN_DIMS[0]].set(
        params["b0"].reshape(-1).astype(f32))
    Bias = Bias.at[2, 0:HIDDEN_DIMS[1]].set(
        params["b1"].reshape(-1).astype(f32))

    W2 = jnp.zeros((128, 128), f32).at[0:2 * ENC_IN, 0:HIDDEN_DIMS[0]].set(
        params["w0"].astype(f32))
    W3 = jnp.zeros((128, 128), f32).at[0:HIDDEN_DIMS[0], 0:HIDDEN_DIMS[1]].set(
        params["w1"].astype(f32))
    W4 = jnp.zeros((128, 128), f32).at[0:HIDDEN_DIMS[1], 0:OUTPUT_DIM].set(
        params["wlast"].astype(f32))

    return jnp.concatenate([W1x, W1s, Bias, W2, W3, W4], axis=0).astype(dtype)


# --------------------------------- wrapper ------------------------------------
def projectorh_forward(x, stats, params, *, dtype=jnp.bfloat16):
    B, S, C, F = x.shape
    assert S == SEQ_LEN and C == 24 and F == FEATURE_NUM

    # free contiguous reshapes — no repack pass over HBM
    x2d = x.reshape(B, X_COLS)               # (B, 768)
    s2d = stats.reshape(B, L)                # (B, 96)
    w_packed = pack_params(params, dtype)    # (1256, 128), resident

    # batch block: multiple of 16 (covers f32 (8,128) and bf16 (16,128) tiles),
    # capped at 2048 rows so double-buffered blocks stay inside v7x's 32 MiB
    # default scoped VMEM while amortizing the per-grid-step overhead.
    b_blk = min(MAX_BLOCK_ROWS, _round_up(B, 16))
    b_pad = _round_up(B, b_blk)
    if b_pad != B:
        # TODO(synk): for production B far from a block multiple, pick b_blk to
        # divide B (this pad copies the activations once).
        x2d = jnp.pad(x2d, ((0, b_pad - B), (0, 0)))
        s2d = jnp.pad(s2d, ((0, b_pad - B), (0, 0)))

    cost = pl.CostEstimate(
        flops=b_pad * 2 * (X_COLS * 128 + L * 128 + 3 * 128 * 128),
        transcendentals=0,
        bytes_accessed=int(x2d.size * x2d.dtype.itemsize
                           + s2d.size * s2d.dtype.itemsize
                           + w_packed.size * w_packed.dtype.itemsize
                           + b_pad * 128 * jnp.dtype(dtype).itemsize))

    out = pl.pallas_call(
        projectorh_kernel,
        out_shape=jax.ShapeDtypeStruct((b_pad, 128), dtype),
        grid_spec=pltpu.PrefetchScalarGridSpec(
            num_scalar_prefetch=0,
            grid=(b_pad // b_blk,),
            in_specs=[
                pl.BlockSpec((b_blk, X_COLS), lambda i: (i, 0)),
                pl.BlockSpec((b_blk, L), lambda i: (i, 0)),
                pl.BlockSpec((PACKED_ROWS, 128), lambda i: (0, 0)),  # resident
            ],
            out_specs=pl.BlockSpec((b_blk, 128), lambda i: (i, 0)),
        ),
        compiler_params=pltpu.CompilerParams(
            dimension_semantics=("parallel",)),   # shards batch across TCs on v7x
        cost_estimate=cost,
    )(x2d, s2d, w_packed)

    return out[:B, :OUTPUT_DIM]


# ------------------------------ pure-JAX reference ----------------------------
def projectorh_reference(x, stats, params):
    B, S, _, F = x.shape
    xr = x.reshape(B, S, 24 * F)
    xpad = jnp.pad(xr, ((0, 0), (0, 0), (1, 1)), mode="reflect")
    cw = params["conv_w"]                                            # (S, 3)
    conv = sum(jnp.einsum("bsl,s->bl", xpad[:, :, k:k + 24 * F], cw[:, k])
               for k in range(3))                                    # (B, L)
    z = jnp.concatenate([conv.reshape(B, 24, F),
                         stats.reshape(B, 24, F)], axis=1)           # (B, 48, F)
    fc = jax.nn.relu(z @ params["fc_w"].reshape(F, 1) + params["fc_b"])
    u = fc[..., 0]                                                   # (B, 48)
    h = jax.nn.relu(u @ params["w0"] + params["b0"])
    h = jax.nn.relu(h @ params["w1"] + params["b1"])
    return h @ params["wlast"]


# ----------------------------------- main --------------------------------------
if __name__ == "__main__":
    key = jax.random.PRNGKey(0)
    keys = jax.random.split(key, 12)

    def init(k, shape, fan_in):
        return (jax.random.uniform(k, shape, jnp.float32, -1.0, 1.0)
                / np.float32(np.sqrt(fan_in)))

    params = {
        "conv_w": init(keys[0], (SEQ_LEN, 3), SEQ_LEN * 3),          # Conv1d weight[0]
        "fc_w":   init(keys[1], (FEATURE_NUM,), FEATURE_NUM),        # Linear(F,1).weight[0]
        "fc_b":   init(keys[2], (1,), FEATURE_NUM),
        "w0":     init(keys[3], (2 * ENC_IN, HIDDEN_DIMS[0]), 2 * ENC_IN),
        "b0":     init(keys[4], (1, HIDDEN_DIMS[0]), 2 * ENC_IN),
        "w1":     init(keys[5], (HIDDEN_DIMS[0], HIDDEN_DIMS[1]), HIDDEN_DIMS[0]),
        "b1":     init(keys[6], (1, HIDDEN_DIMS[1]), HIDDEN_DIMS[0]),
        "wlast":  init(keys[7], (HIDDEN_DIMS[1], OUTPUT_DIM), HIDDEN_DIMS[1]),
    }

    B = 2
    x = jax.random.normal(keys[8], (B, SEQ_LEN, 24, FEATURE_NUM), jnp.float32)
    stats = jax.random.normal(keys[9], (B, 1, 24, FEATURE_NUM), jnp.float32)
    y_ref = projectorh_reference(x, stats, params)

    # exact f32 path (tight tolerance)
    y32 = jax.block_until_ready(
        projectorh_forward(x, stats, params, dtype=jnp.float32))
    np.testing.assert_allclose(np.asarray(y32), np.asarray(y_ref),
                               rtol=1e-4, atol=1e-5)
    assert y32.shape == (B, OUTPUT_DIM)

    # default path: bf16 MXU operands + bf16 store, f32 accumulation
    y16 = jax.block_until_ready(projectorh_forward(x, stats, params))
    np.testing.assert_allclose(np.asarray(y16.astype(jnp.float32)),
                               np.asarray(y_ref), rtol=1e-1, atol=1e-1)

    # bf16 activations already in HBM (halves the activation DMA)
    y16b = jax.block_until_ready(
        projectorh_forward(x.astype(jnp.bfloat16),
                           stats.astype(jnp.bfloat16), params))
    np.testing.assert_allclose(np.asarray(y16b.astype(jnp.float32)),
                               np.asarray(y_ref), rtol=1e-1, atol=1e-1)

    # multi-block grid + batch-padding path (f32, tight)
    B2 = 2500
    x2 = jax.random.normal(keys[10], (B2, SEQ_LEN, 24, FEATURE_NUM), jnp.float32)
    st2 = jax.random.normal(keys[11], (B2, 1, 24, FEATURE_NUM), jnp.float32)
    y2 = jax.block_until_ready(
        projectorh_forward(x2, st2, params, dtype=jnp.float32))
    np.testing.assert_allclose(np.asarray(y2),
                               np.asarray(projectorh_reference(x2, st2, params)),
                               rtol=1e-4, atol=1e-5)

    # TODO(synk): torch .squeeze() would drop the batch dim when B == 1; this
    # implementation keeps (B, output_dim).
    print("KERNEL_OK")
</pallas_src>

<mosaic_0001>
module attributes {stable_mosaic.version = 11 : i64} {
  func.func @projectorh_kernel(%arg0: i32, %arg1: memref<16x768xf32, #tpu.memory_space<vmem>>, %arg2: memref<16x96xf32, #tpu.memory_space<vmem>>, %arg3: memref<1256x128xf32, #tpu.memory_space<vmem>>, %arg4: memref<16x128xf32, #tpu.memory_space<vmem>>) attributes {dimension_semantics = [#tpu.dimension_semantics<parallel>], iteration_bounds = array<i64: 1>, scalar_prefetch = 0 : i64, scratch_operands = 0 : i64, tpu.core_type = #tpu.core_type<tc>, window_params = [{transform_indices = @transform_0, window_bounds = array<i64: 16, 768>}, {transform_indices = @transform_1, window_bounds = array<i64: 16, 96>}, {pipeline_mode = #tpu.pipeline_mode<synchronous>, transform_indices = @transform_2, window_bounds = array<i64: 1256, 128>}, {transform_indices = @transform_3, window_bounds = array<i64: 16, 128>}]} {
    %c0 = arith.constant 0 : index
    %c0_0 = arith.constant 0 : index
    %0 = vector.load %arg3[%c0, %c0_0] : memref<1256x128xf32, #tpu.memory_space<vmem>>, vector<768x128xf32>
    %c768 = arith.constant 768 : index
    %c0_1 = arith.constant 0 : index
    %1 = vector.load %arg3[%c768, %c0_1] : memref<1256x128xf32, #tpu.memory_space<vmem>>, vector<96x128xf32>
    %c864 = arith.constant 864 : index
    %c0_2 = arith.constant 0 : index
    %2 = vector.load %arg3[%c864, %c0_2] : memref<1256x128xf32, #tpu.memory_space<vmem>>, vector<8x128xf32>
    %c872 = arith.constant 872 : index
    %c0_3 = arith.constant 0 : index
    %3 = vector.load %arg3[%c872, %c0_3] : memref<1256x128xf32, #tpu.memory_space<vmem>>, vector<128x128xf32>
    %c1000 = arith.constant 1000 : index
    %c0_4 = arith.constant 0 : index
    %4 = vector.load %arg3[%c1000, %c0_4] : memref<1256x128xf32, #tpu.memory_space<vmem>>, vector<128x128xf32>
    %c1128 = arith.constant 1128 : index
    %c0_5 = arith.constant 0 : index
    %5 = vector.load %arg3[%c1128, %c0_5] : memref<1256x128xf32, #tpu.memory_space<vmem>>, vector<128x128xf32>
    %c0_6 = arith.constant 0 : index
    %c0_7 = arith.constant 0 : index
    %6 = vector.load %arg1[%c0_6, %c0_7] : memref<16x768xf32, #tpu.memory_space<vmem>>, vector<16x768xf32>
    %cst = arith.constant dense<0.000000e+00> : vector<16x128xf32>
    %7 = tpu.matmul %6, %0, %cst {dimension_numbers = #tpu.dot_dimension_numbers<[1], [0], [0], [1], [0, 0, 1, 1], [], []>} : vector<16x768xf32>, vector<768x128xf32>, vector<16x128xf32> -> vector<16x128xf32>
    %c0_8 = arith.constant 0 : index
    %c0_9 = arith.constant 0 : index
    %8 = vector.load %arg2[%c0_8, %c0_9] : memref<16x96xf32, #tpu.memory_space<vmem>>, vector<16x96xf32>
    %cst_10 = arith.constant dense<0.000000e+00> : vector<16x128xf32>
    %9 = tpu.matmul %8, %1, %cst_10 {dimension_numbers = #tpu.dot_dimension_numbers<[1], [0], [0], [1], [0, 0, 1, 1], [], []>} : vector<16x96xf32>, vector<96x128xf32>, vector<16x128xf32> -> vector<16x128xf32>
    %10 = arith.addf %7, %9 : vector<16x128xf32>
    %11 = vector.extract_strided_slice %2 {offsets = [0, 0], sizes = [1, 128], strides = [1, 1]} : vector<8x128xf32> to vector<1x128xf32>
    %12 = vector.broadcast %11 : vector<1x128xf32> to vector<16x128xf32>
    %13 = arith.addf %10, %12 : vector<16x128xf32>
    %cst_11 = arith.constant 0.000000e+00 : f32
    %14 = vector.broadcast %cst_11 : f32 to vector<16x128xf32>
    %15 = arith.maximumf %13, %14 : vector<16x128xf32>
    %cst_12 = arith.constant dense<0.000000e+00> : vector<16x128xf32>
    %16 = tpu.matmul %15, %3, %cst_12 {dimension_numbers = #tpu.dot_dimension_numbers<[1], [0], [0], [1], [0, 0, 1, 1], [], []>} : vector<16x128xf32>, vector<128x128xf32>, vector<16x128xf32> -> vector<16x128xf32>
    %17 = vector.extract_strided_slice %2 {offsets = [1, 0], sizes = [1, 128], strides = [1, 1]} : vector<8x128xf32> to vector<1x128xf32>
    %18 = vector.broadcast %17 : vector<1x128xf32> to vector<16x128xf32>
    %19 = arith.addf %16, %18 : vector<16x128xf32>
    %cst_13 = arith.constant 0.000000e+00 : f32
    %20 = vector.broadcast %cst_13 : f32 to vector<16x128xf32>
    %21 = arith.maximumf %19, %20 : vector<16x128xf32>
    %cst_14 = arith.constant dense<0.000000e+00> : vector<16x128xf32>
    %22 = tpu.matmul %21, %4, %cst_14 {dimension_numbers = #tpu.dot_dimension_numbers<[1], [0], [0], [1], [0, 0, 1, 1], [], []>} : vector<16x128xf32>, vector<128x128xf32>, vector<16x128xf32> -> vector<16x128xf32>
    %23 = vector.extract_strided_slice %2 {offsets = [2, 0], sizes = [1, 128], strides = [1, 1]} : vector<8x128xf32> to vector<1x128xf32>
    %24 = vector.broadcast %23 : vector<1x128xf32> to vector<16x128xf32>
    %25 = arith.addf %22, %24 : vector<16x128xf32>
    %cst_15 = arith.constant 0.000000e+00 : f32
    %26 = vector.broadcast %cst_15 : f32 to vector<16x128xf32>
    %27 = arith.maximumf %25, %26 : vector<16x128xf32>
    %cst_16 = arith.constant dense<0.000000e+00> : vector<16x128xf32>
    %28 = tpu.matmul %27, %5, %cst_16 {dimension_numbers = #tpu.dot_dimension_numbers<[1], [0], [0], [1], [0, 0, 1, 1], [], []>} : vector<16x128xf32>, vector<128x128xf32>, vector<16x128xf32> -> vector<16x128xf32>
    %c0_17 = arith.constant 0 : index
    %c0_18 = arith.constant 0 : index
    %29 = vector.load %arg4[%c0_17, %c0_18] : memref<16x128xf32, #tpu.memory_space<vmem>>, vector<16x128xf32>
    tpu.vector_store %arg4[%c0_17, %c0_18], %28 {strides = array<i32>} : memref<16x128xf32, #tpu.memory_space<vmem>>, vector<16x128xf32>,
    return
  }
  func.func @transform_0(%arg0: i32) -> (i32, i32) {
    %c0_i32 = arith.constant 0 : i32
    %c0_i32_0 = arith.constant 0 : i32
    return %arg0, %c0_i32 : i32, i32
  }
  func.func @transform_1(%arg0: i32) -> (i32, i32) {
    %c0_i32 = arith.constant 0 : i32
    %c0_i32_0 = arith.constant 0 : i32
    return %arg0, %c0_i32 : i32, i32
  }
  func.func @transform_2(%arg0: i32) -> (i32, i32) {
    %c0_i32 = arith.constant 0 : i32
    %c0_i32_0 = arith.constant 0 : i32
    %c0_i32_1 = arith.constant 0 : i32
    return %c0_i32, %c0_i32_0 : i32, i32
  }
  func.func @transform_3(%arg0: i32) -> (i32, i32) {
    %c0_i32 = arith.constant 0 : i32
    %c0_i32_0 = arith.constant 0 : i32
    return %arg0, %c0_i32 : i32, i32
  }
}

</mosaic_0001>

<bundles_post_ra>
// kernel: tpu_custom_call.1
= control target key start
LH: loop header
LB: loop body
LE: loop exit
PB: predicated region body
PF: predicated region fallthrough
CT: control target
= control target key end

     0   :  { %8 = vsyncpa [#allocation3], 0  ;;  %s687_s0 = inlined_call_operand.hbm [shape: f32[16,768], index: 0, kind: input, shape index: {}]   ;;  %s688_s1 = inlined_call_operand.hbm [shape: f32[16,96], index: 1, kind: input, shape index: {}]   ;;  %s689_s2 = inlined_call_operand.hbm [shape: f32[1256,128], index: 2, kind: input, shape index: {}]   ;;  %s690_s3 = inlined_call_operand.hbm [shape: f32[16,128], index: 3, kind: output, shape index: {}]  }
   0x1   :  { %9 = vsyncpa [#allocation6], 0  ;;  %s28_s14 = sshll.u32 %s688_s1, 4  ;;  %s29_s14 = int_to_ptr.hbm [resolvable:$true] %s28_s14 }
   0x2   :  { %10 = vsyncpa [#allocation4], 0  ;;  %s631_s15 = smov [#allocation5]   ;;  %s15_s19 = sshll.u32 %s687_s0, 4  ;;  %s16_s19 = int_to_ptr.hbm [resolvable:$true] %s15_s19 }
   0x3   :  { %s30_s16 = sshll.u32 %s631_s15, 4  ;;  %s632_s20 = smov 128   ;;  %s31_s16 = int_to_ptr.vmem [resolvable:$true] %s30_s16 }
   0x4   :  { %s633_s21 = smov 8   ;;  %s634_s22 = smov [#allocation2]  }
   0x5   :  { %36 = dma.hbm_to_vmem [thread:$0]  %s29_s14, 256, %s31_s16, [#allocation6], %s632_s20, %s632_s20, %s633_s21  }
   0x6   :  { %s17_s23 = sshll.u32 %s634_s22, 4  ;;  %s635_s1 = smov 768   ;;  %s18_s23 = int_to_ptr.vmem [resolvable:$true] %s17_s23 }
   0x7   :  { %s636_s24 = smov 48   ;;  %s41_s27 = sshll.u32 %s689_s2, 4  ;;  %s42_s27 = int_to_ptr.hbm [resolvable:$true] %s41_s27 }
   0x8   :  { %23 = dma.hbm_to_vmem [thread:$0]  %s16_s19, 1536, %s18_s23, [#allocation3], %s635_s1, %s635_s1, %s636_s24  }
   0x9   :  { %s637_s28 = smov [#allocation7]  }
   0xa   :  { %s43_s0 = sshll.u32 %s637_s28, 4  ;;  %s44_s0 = int_to_ptr.vmem [resolvable:$true] %s43_s0 }
   0xb   :  { %49 = dma.hbm_to_vmem [thread:$0]  %s42_s27, 20096, %s44_s0, [#allocation6], %s632_s20, %s632_s20, %s633_s21  }
   0xc   :  { %625 = dma.done.wait [#allocation3], 1536  }
   0xd   :  { %626 = vsyncadd [#allocation3], 4294965760 }
   0xe   :  { %627 = dma.done.wait [#allocation6], 20352  }
   0xf   :  { %628 = vsyncadd [#allocation6], 4294946944  ;;  %v169_v0 = vld [vmem:[#allocation7 + $0x358] sm:$0xff]  ;;  %v168_v3 = vld [vmem:[#allocation7 + $0x350] sm:$0xff]  ;;  %vm233_vm0 = vcmask 785408   ;;  %s638_s2 = smov [#allocation8]  }
  0x10   :  { %v77_v1 = vld [vmem:[#allocation7 + $0x78] sm:$0xff]  ;;  %244 = vmatpush.msra.mxu0 %v169_v0  ;;  %v76_v4 = vld [vmem:[#allocation7 + $0x70] sm:$0xff]  ;;  %v167_v6 = vld [vmem:[#allocation7 + $0x348] sm:$0xff]  ;;  %s487_s29 = sshll.u32 %s638_s2, 4  ;;  %s489_s5 = sshll.u32 %s690_s3, 4  ;;  %s488_s29 = int_to_ptr.vmem [resolvable:$true] %s487_s29  ;;  %s490_s5 = int_to_ptr.hbm [resolvable:$true] %s489_s5 }
  0x11   :  { %v93_v2 = vld [vmem:[#allocation7 + $0xf8] sm:$0xff]  ;;  %263 = vmatpush.msra.mxu1 %v77_v1  ;;  %v92_v5 = vld [vmem:[#allocation7 + $0xf0] sm:$0xff]  ;;  %v75_v7 = vld [vmem:[#allocation7 + $0x68] sm:$0xff] }
  0x12   :  { %286 = vmatpush.msra.mxu2 %v93_v2  ;;  %245 = vmatpush.msra.mxu0 %v168_v3  ;;  %v91_v8 = vld [vmem:[#allocation7 + $0xe8] sm:$0xff]  ;;  %v166_v9 = vld [vmem:[#allocation7 + $0x340] sm:$0xff]  ;;  %v165_v12 = vld [vmem:[#allocation7 + $0x338] sm:$0xff] }
  0x13   :  { %264 = vmatpush.msra.mxu1 %v76_v4  ;;  %v74_v10 = vld [vmem:[#allocation7 + $0x60] sm:$0xff]  ;;  %v73_v13 = vld [vmem:[#allocation7 + $0x58] sm:$0xff]  ;;  %v164_v15 = vld [vmem:[#allocation7 + $0x330] sm:$0xff] }
  0x14   :  { %287 = vmatpush.msra.mxu2 %v92_v5  ;;  %246 = vmatpush.msra.mxu0 %v167_v6  ;;  %v90_v11 = vld [vmem:[#allocation7 + $0xe0] sm:$0xff]  ;;  %v89_v14 = vld [vmem:[#allocation7 + $0xd8] sm:$0xff]  ;;  %v72_v16 = vld [vmem:[#allocation7 + $0x50] sm:$0xff] }
  0x15   :  { %265 = vmatpush.msra.mxu1 %v75_v7  ;;  %v109_v17 = vld [vmem:[#allocation7 + $0x178] sm:$0xff]  ;;  %v88_v18 = vld [vmem:[#allocation7 + $0xd0] sm:$0xff]  ;;  %v163_v20 = vld [vmem:[#allocation7 + $0x328] sm:$0xff] }
  0x16   :  { %288 = vmatpush.msra.mxu2 %v91_v8  ;;  %247 = vmatpush.msra.mxu0 %v166_v9  ;;  %v108_v19 = vld [vmem:[#allocation7 + $0x170] sm:$0xff]  ;;  %v71_v21 = vld [vmem:[#allocation7 + $0x48] sm:$0xff]  ;;  %v162_v24 = vld [vmem:[#allocation7 + $0x320] sm:$0xff] }
  0x17   :  { %266 = vmatpush.msra.mxu1 %v74_v10  ;;  %309 = vmatpush.msra.mxu3 %v109_v17  ;;  %v87_v22 = vld [vmem:[#allocation7 + $0xc8] sm:$0xff]  ;;  %v70_v25 = vld [vmem:[#allocation7 + $0x40] sm:$0xff]  ;;  %v161_v28 = vld [vmem:[#allocation7 + $0x318] sm:$0xff] }
  0x18   :  { %289 = vmatpush.msra.mxu2 %v90_v11  ;;  %248 = vmatpush.msra.mxu0 %v165_v12  ;;  %v107_v23 = vld [vmem:[#allocation7 + $0x168] sm:$0xff]  ;;  %v86_v26 = vld [vmem:[#allocation7 + $0xc0] sm:$0xff]  ;;  %v69_v29 = vld [vmem:[#allocation7 + $0x38] sm:$0xff] }
  0x19   :  { %267 = vmatpush.msra.mxu1 %v73_v13  ;;  %310 = vmatpush.msra.mxu3 %v108_v19  ;;  %v106_v27 = vld [vmem:[#allocation7 + $0x160] sm:$0xff]  ;;  %v85_v30 = vld [vmem:[#allocation7 + $0xb8] sm:$0xff]  ;;  %v160_v32 = vld [vmem:[#allocation7 + $0x310] sm:$0xff] }
  0x1a   :  { %290 = vmatpush.msra.mxu2 %v89_v14  ;;  %249 = vmatpush.msra.mxu0 %v164_v15  ;;  %v105_v31 = vld [vmem:[#allocation7 + $0x158] sm:$0xff]  ;;  %v68_v33 = vld [vmem:[#allocation7 + $0x30] sm:$0xff]  ;;  %v159_v36 = vld [vmem:[#allocation7 + $0x308] sm:$0xff] }
  0x1b   :  { %268 = vmatpush.msra.mxu1 %v72_v16  ;;  %311 = vmatpush.msra.mxu3 %v107_v23  ;;  %v84_v34 = vld [vmem:[#allocation7 + $0xb0] sm:$0xff]  ;;  %v67_v37 = vld [vmem:[#allocation7 + $0x28] sm:$0xff]  ;;  %v158_v40 = vld [vmem:[#allocation7 + $0x300] sm:$0xff] }
  0x1c   :  { %291 = vmatpush.msra.mxu2 %v88_v18  ;;  %250 = vmatpush.msra.mxu0 %v163_v20  ;;  %v104_v35 = vld [vmem:[#allocation7 + $0x150] sm:$0xff]  ;;  %v83_v38 = vld [vmem:[#allocation7 + $0xa8] sm:$0xff]  ;;  %v66_v41 = vld [vmem:[#allocation7 + $0x20] sm:$0xff] }
  0x1d   :  { %269 = vmatpush.msra.mxu1 %v71_v21  ;;  %312 = vmatpush.msra.mxu3 %v106_v27  ;;  %v103_v39 = vld [vmem:[#allocation7 + $0x148] sm:$0xff]  ;;  %v82_v42 = vld [vmem:[#allocation7 + $0xa0] sm:$0xff]  ;;  %v125_v43 = vld [vmem:[#allocation7 + $0x1f8] sm:$0xff] }
  0x1e   :  { %292 = vmatpush.msra.mxu2 %v87_v22  ;;  %251 = vmatpush.msra.mxu0 %v162_v24  ;;  %v65_v44 = vld [vmem:[#allocation7 + $0x18] sm:$0xff]  ;;  %v102_v45 = vld [vmem:[#allocation7 + $0x140] sm:$0xff]  ;;  %v124_v47 = vld [vmem:[#allocation7 + $0x1f0] sm:$0xff] }
  0x1f   :  { %270 = vmatpush.msra.mxu1 %v70_v25  ;;  %313 = vmatpush.msra.mxu3 %v105_v31  ;;  %v81_v46 = vld [vmem:[#allocation7 + $0x98] sm:$0xff]  ;;  %v64_v48 = vld [vmem:[#allocation7 + $0x10] sm:$0xff]  ;;  %v123_v51 = vld [vmem:[#allocation7 + $0x1e8] sm:$0xff] }
  0x20   :  { %293 = vmatpush.msra.mxu2 %v86_v26  ;;  %252 = vmatpush.msra.mxu0 %v161_v28  ;;  %v101_v49 = vld [vmem:[#allocation7 + $0x138] sm:$0xff]  ;;  %v80_v50 = vld [vmem:[#allocation7 + $0x90] sm:$0xff]  ;;  %v63_v52 = vld [vmem:[#allocation7 + $0x8] sm:$0xff] }
  0x21   :  { %271 = vmatpush.msra.mxu1 %v69_v29  ;;  %314 = vmatpush.msra.mxu3 %v104_v35  ;;  %v100_v53 = vld [vmem:[#allocation7 + $0x130] sm:$0xff]  ;;  %v79_v54 = vld [vmem:[#allocation7 + $0x88] sm:$0xff]  ;;  %v122_v55 = vld [vmem:[#allocation7 + $0x1e0] sm:$0xff] }
  0x22   :  { %294 = vmatpush.msra.mxu2 %v85_v30  ;;  %253 = vmatpush.msra.mxu0 %v160_v32  ;;  %v62_v56 = vld [vmem:[#allocation7] sm:$0xff]  ;;  %v99_v57 = vld [vmem:[#allocation7 + $0x128] sm:$0xff]  ;;  %v121_v59 = vld [vmem:[#allocation7 + $0x1d8] sm:$0xff] }
  0x23   :  { %272 = vmatpush.msra.mxu1 %v68_v33  ;;  %315 = vmatpush.msra.mxu3 %v103_v39  ;;  %v78_v58 = vld [vmem:[#allocation7 + $0x80] sm:$0xff]  ;;  %v141_v60 = vld [vmem:[#allocation7 + $0x278] sm:$0xff]  ;;  %v120_v62 = vld [vmem:[#allocation7 + $0x1d0] sm:$0xff] }
  0x24   :  { %295 = vmatpush.msra.mxu2 %v84_v34  ;;  %254 = vmatpush.msra.mxu0 %v159_v36  ;;  %v157_v61 = vld [vmem:[#allocation7 + $0x2f8] sm:$0xff]  ;;  %v98_v63 = vld [vmem:[#allocation7 + $0x120] sm:$0xff]  ;;  %v140_v0 = vld [vmem:[#allocation7 + $0x270] sm:$0xff] }
  0x25   :  { %273 = vmatpush.msra.mxu1 %v67_v37  ;;  %316 = vmatpush.msra.mxu3 %v102_v45  ;;  %v156_v1 = vld [vmem:[#allocation7 + $0x2f0] sm:$0xff]  ;;  %v119_v2 = vld [vmem:[#allocation7 + $0x1c8] sm:$0xff]  ;;  %v97_v3 = vld [vmem:[#allocation7 + $0x118] sm:$0xff] }
  0x26   :  { %296 = vmatpush.msra.mxu2 %v83_v38  ;;  %255 = vmatpush.msra.mxu0 %v158_v40  ;;  %v139_v4 = vld [vmem:[#allocation7 + $0x268] sm:$0xff]  ;;  %v118_v6 = vld [vmem:[#allocation7 + $0x1c0] sm:$0xff]  ;;  %v96_v7 = vld [vmem:[#allocation7 + $0x110] sm:$0xff] }
  0x27   :  { %274 = vmatpush.msra.mxu1 %v66_v41  ;;  %317 = vmatpush.msra.mxu3 %v101_v49  ;;  %v155_v5 = vld [vmem:[#allocation7 + $0x2e8] sm:$0xff]  ;;  %v138_v8 = vld [vmem:[#allocation7 + $0x260] sm:$0xff]  ;;  %v231_v10 = vld [vmem:[#allocation5] sm:$0xff] }
  0x28   :  { %297 = vmatpush.msra.mxu2 %v82_v42  ;;  %332 = vmatpush.msrb.mxu0 %v125_v43  ;;  %v154_v9 = vld [vmem:[#allocation7 + $0x2e0] sm:$0xff]  ;;  %v95_v11 = vld [vmem:[#allocation7 + $0x108] sm:$0xff]  ;;  %v117_v12 = vld [vmem:[#allocation7 + $0x1b8] sm:$0xff] }
  0x29   :  { %275 = vmatpush.msra.mxu1 %v65_v44  ;;  %318 = vmatpush.msra.mxu3 %v100_v53  ;;  %v137_v13 = vld [vmem:[#allocation7 + $0x258] sm:$0xff]  ;;  %v94_v15 = vld [vmem:[#allocation7 + $0x100] sm:$0xff]  ;;  %v116_v16 = vld [vmem:[#allocation7 + $0x1b0] sm:$0xff] }
  0x2a   :  { %298 = vmatpush.msra.mxu2 %v81_v46  ;;  %333 = vmatpush.msrb.mxu0 %v124_v47  ;;  %v153_v14 = vld [vmem:[#allocation7 + $0x2d8] sm:$0xff]  ;;  %v136_v17 = vld [vmem:[#allocation7 + $0x250] sm:$0xff]  ;;  %v115_v20 = vld [vmem:[#allocation7 + $0x1a8] sm:$0xff] }
  0x2b   :  { %276 = vmatpush.msra.mxu1 %v64_v48  ;;  %319 = vmatpush.msra.mxu3 %v99_v57  ;;  %v152_v18 = vld [vmem:[#allocation7 + $0x2d0] sm:$0xff]  ;;  %v135_v21 = vld [vmem:[#allocation7 + $0x248] sm:$0xff]  ;;  %v221_v23 = vld [vmem:[#allocation2 + $0x10] sm:$0xff] }
  0x2c   :  { %299 = vmatpush.msra.mxu2 %v80_v50  ;;  %334 = vmatpush.msrb.mxu0 %v123_v51  ;;  %v219_v19 = vld [vmem:[#allocation2] sm:$0xff]  ;;  %v151_v22 = vld [vmem:[#allocation7 + $0x2c8] sm:$0xff]  ;;  %v220_v24 = vld [vmem:[#allocation2 + $0x8] sm:$0xff] }
  0x2d   :  { %277 = vmatpush.msra.mxu1 %v63_v52  ;;  %320 = vmatpush.msra.mxu3 %v98_v63  ;;  %v114_v25 = vld [vmem:[#allocation7 + $0x1a0] sm:$0xff]  ;;  %v232_v28 = vld [vmem:[#allocation5 + $0x8] sm:$0xff]  ;;  %v112_v32 = vld [vmem:[#allocation7 + $0x190] sm:$0xff] }
  0x2e   :  { %300 = vmatpush.msra.mxu2 %v79_v54  ;;  %335 = vmatpush.msrb.mxu0 %v122_v55  ;;  %v134_v26 = vld [vmem:[#allocation7 + $0x240] sm:$0xff]  ;;  %v113_v29 = vld [vmem:[#allocation7 + $0x198] sm:$0xff]  ;;  %v132_v33 = vld [vmem:[#allocation7 + $0x230] sm:$0xff] }
  0x2f   :  { %278 = vmatpush.msra.mxu1 %v62_v56  ;;  %321 = vmatpush.msra.mxu3 %v97_v3  ;;  %v150_v27 = vld [vmem:[#allocation7 + $0x2c0] sm:$0xff]  ;;  %v133_v30 = vld [vmem:[#allocation7 + $0x238] sm:$0xff]  ;;  %v148_v34 = vld [vmem:[#allocation7 + $0x2b0] sm:$0xff] }
  0x30   :  { %301 = vmatpush.msra.mxu2 %v78_v58  ;;  %336 = vmatpush.msrb.mxu0 %v121_v59  ;;  %v149_v31 = vld [vmem:[#allocation7 + $0x2b8] sm:$0xff]  ;;  %v225_v35 = vld [vmem:[#allocation2 + $0x30] sm:$0xff]  ;;  %v111_v36 = vld [vmem:[#allocation7 + $0x188] sm:$0xff] }
  0x31   :  { %355 = vmatpush.msrb.mxu1 %v141_v60  ;;  %322 = vmatpush.msra.mxu3 %v96_v7  ;;  %v131_v37 = vld [vmem:[#allocation7 + $0x228] sm:$0xff]  ;;  %v227_v39 = vld [vmem:[#allocation2 + $0x40] sm:$0xff]  ;;  %v110_v41 = vld [vmem:[#allocation7 + $0x180] sm:$0xff] }
  0x32   :  { %378 = vmatpush.msrb.mxu2 %v157_v61  ;;  %337 = vmatpush.msrb.mxu0 %v120_v62  ;;  %v147_v38 = vld [vmem:[#allocation7 + $0x2a8] sm:$0xff]  ;;  %v130_v42 = vld [vmem:[#allocation7 + $0x220] sm:$0xff]  ;;  %v129_v45 = vld [vmem:[#allocation7 + $0x218] sm:$0xff] }
  0x33   :  { %356 = vmatpush.msrb.mxu1 %v140_v0  ;;  %503 = vmatmul.msk.f32.vlgmr.msra.gmra.mxu0 %vm233_vm0, %v231_v10  ;;  %v226_v40 = vld [vmem:[#allocation2 + $0x38] sm:$0xff]  ;;  %v146_v43 = vld [vmem:[#allocation7 + $0x2a0] sm:$0xff]  ;;  %v145_v46 = vld [vmem:[#allocation7 + $0x298] sm:$0xff] }
  0x34   :  { %379 = vmatpush.msrb.mxu2 %v156_v1  ;;  %338 = vmatpush.msrb.mxu0 %v119_v2  ;;  %v222_v44 = vld [vmem:[#allocation2 + $0x18] sm:$0xff]  ;;  %v128_v47 = vld [vmem:[#allocation7 + $0x210] sm:$0xff]  ;;  %v126_v51 = vld [vmem:[#allocation7 + $0x200] sm:$0xff] }
  0x35   :  { %357 = vmatpush.msrb.mxu1 %v139_v4  ;;  %323 = vmatpush.msra.mxu3 %v95_v11  ;;  %v144_v48 = vld [vmem:[#allocation7 + $0x290] sm:$0xff]  ;;  %v127_v49 = vld [vmem:[#allocation7 + $0x208] sm:$0xff]  ;;  %v142_v52 = vld [vmem:[#allocation7 + $0x280] sm:$0xff] }
  0x36   :  { %380 = vmatpush.msrb.mxu2 %v155_v5  ;;  %339 = vmatpush.msrb.mxu0 %v118_v6  ;;  %v143_v50 = vld [vmem:[#allocation7 + $0x288] sm:$0xff]  ;;  %v228_v53 = vld [vmem:[#allocation2 + $0x48] sm:$0xff]  ;;  %v223_v54 = vld [vmem:[#allocation2 + $0x20] sm:$0xff] }
  0x37   :  { %358 = vmatpush.msrb.mxu1 %v138_v8  ;;  %324 = vmatpush.msra.mxu3 %v94_v15  ;;  %v224_v55 = vld [vmem:[#allocation2 + $0x28] sm:$0xff]  ;;  %v229_v56 = vld [vmem:[#allocation2 + $0x50] sm:$0xff]  ;;  %v230_v57 = vld [vmem:[#allocation2 + $0x58] sm:$0xff] }
  0x38   :  { %381 = vmatpush.msrb.mxu2 %v154_v9  ;;  %340 = vmatpush.msrb.mxu0 %v117_v12  ;;  %v186_v58 = vld [vmem:[#allocation7 + $0x3e0] sm:$0xff]  ;;  %v185_v59 = vld [vmem:[#allocation7 + $0x3d8] sm:$0xff]  ;;  %v184_v60 = vld [vmem:[#allocation7 + $0x3d0] sm:$0xff] }
  0x39   :  { %359 = vmatpush.msrb.mxu1 %v137_v13  ;;  %325 = vmatmul.f32.vlgmr.msra.gmra.mxu3 %v221_v23  ;;  %v183_v61 = vld [vmem:[#allocation7 + $0x3c8] sm:$0xff]  ;;  %v182_v62 = vld [vmem:[#allocation7 + $0x3c0] sm:$0xff]  ;;  %v181_v63 = vld [vmem:[#allocation7 + $0x3b8] sm:$0xff] }
  0x3a   :  { %382 = vmatpush.msrb.mxu2 %v153_v14  ;;  %341 = vmatpush.msrb.mxu0 %v116_v16  ;;  %v180_v0 = vld [vmem:[#allocation7 + $0x3b0] sm:$0xff]  ;;  %v179_v1 = vld [vmem:[#allocation7 + $0x3a8] sm:$0xff]  ;;  %v178_v2 = vld [vmem:[#allocation7 + $0x3a0] sm:$0xff] }
  0x3b   :  { %360 = vmatpush.msrb.mxu1 %v136_v17  ;;  %302 = vmatmul.f32.vlgmr.msra.gmra.mxu2 %v220_v24  ;;  %v177_v3 = vld [vmem:[#allocation7 + $0x398] sm:$0xff]  ;;  %v176_v4 = vld [vmem:[#allocation7 + $0x390] sm:$0xff]  ;;  %v175_v5 = vld [vmem:[#allocation7 + $0x388] sm:$0xff] }
  0x3c   :  { %383 = vmatpush.msrb.mxu2 %v152_v18  ;;  %279 = vmatmul.f32.vlgmr.msra.gmra.mxu1 %v219_v19  ;;  %v174_v6 = vld [vmem:[#allocation7 + $0x380] sm:$0xff]  ;;  %v173_v7 = vld [vmem:[#allocation7 + $0x378] sm:$0xff]  ;;  %v172_v8 = vld [vmem:[#allocation7 + $0x370] sm:$0xff] }
  0x3d   :  { %342 = vmatpush.msrb.mxu0 %v115_v20  ;;  %361 = vmatpush.msrb.mxu1 %v135_v21  ;;  %v171_v10 = vld [vmem:[#allocation7 + $0x368] sm:$0xff]  ;;  %v202_v14 = vld [vmem:[#allocation7 + $0x460] sm:$0xff]  ;;  %v201_v15 = vld [vmem:[#allocation7 + $0x458] sm:$0xff] }
  0x3e   :  { %384 = vmatpush.msrb.mxu2 %v151_v22  ;;  %504 = vmatmul.msk.f32.gmra.mxu0 %vm233_vm0, %v232_v28  ;;  %v200_v18 = vld [vmem:[#allocation7 + $0x450] sm:$0xff]  ;;  %v199_v19 = vld [vmem:[#allocation7 + $0x448] sm:$0xff]  ;;  %v198_v22 = vld [vmem:[#allocation7 + $0x440] sm:$0xff] }
  0x3f   :  { %343 = vmatpush.msrb.mxu0 %v114_v25  ;;  %362 = vmatpush.msrb.mxu1 %v134_v26  ;;  %v197_v23 = vld [vmem:[#allocation7 + $0x438] sm:$0xff]  ;;  %v196_v28 = vld [vmem:[#allocation7 + $0x430] sm:$0xff] }
  0x40   :  { %385 = vmatpush.msrb.mxu2 %v150_v27  ;;  %407 = vmatpush.msrb.mxu3 %v186_v58  ;;  %v218_v58 = vld [vmem:[#allocation7 + $0x4e0] sm:$0xff] }
  0x41   :  { %344 = vmatpush.msrb.mxu0 %v113_v29  ;;  %363 = vmatpush.msrb.mxu1 %v133_v30  ;;  %v195_v30 = vld [vmem:[#allocation7 + $0x428] sm:$0xff] }
  0x42   :  { %386 = vmatpush.msrb.mxu2 %v149_v31  ;;  %328 = vmatmul.f32.gmra.mxu3 %v227_v39  ;;  %v676_v31 = vld [vmem:[#allocation7 + $0x360] sm:$0xff] }
  0x43   :  { %345 = vmatpush.msrb.mxu0 %v112_v32  ;;  %364 = vmatpush.msrb.mxu1 %v132_v33 }
  0x44   :  { %387 = vmatpush.msrb.mxu2 %v148_v34  ;;  %282 = vmatmul.f32.gmra.mxu1 %v225_v35  ;;  %v194_v34 = vld [vmem:[#allocation7 + $0x420] sm:$0xff] }
  0x45   :  { %346 = vmatpush.msrb.mxu0 %v111_v36  ;;  %365 = vmatpush.msrb.mxu1 %v131_v37  ;;  %v401_v37 = vperm.slane %v676_v31, 0 }
  0x46   :  { %388 = vmatpush.msrb.mxu2 %v147_v38  ;;  %408 = vmatpush.msrb.mxu3 %v185_v59  ;;  %v193_v38 = vld [vmem:[#allocation7 + $0x418] sm:$0xff] }
  0x47   :  { %305 = vmatmul.f32.gmra.mxu2 %v226_v40  ;;  %347 = vmatpush.msrb.mxu0 %v110_v41  ;;  %v217_v59 = vld [vmem:[#allocation7 + $0x4d8] sm:$0xff] }
  0x48   :  { %366 = vmatpush.msrb.mxu1 %v130_v42  ;;  %389 = vmatpush.msrb.mxu2 %v146_v43  ;;  %v192_v42 = vld [vmem:[#allocation7 + $0x410] sm:$0xff] }
  0x49   :  { %348 = vmatmul.f32.vlgmr.msrb.gmra.mxu0 %v222_v44  ;;  %409 = vmatpush.msrb.mxu3 %v184_v60  ;;  %v216_v60 = vld [vmem:[#allocation7 + $0x4d0] sm:$0xff] }
  0x4a   :  { %367 = vmatpush.msrb.mxu1 %v129_v45  ;;  %390 = vmatpush.msrb.mxu2 %v145_v46  ;;  %v191_v45 = vld [vmem:[#allocation7 + $0x408] sm:$0xff] }
  0x4b   :  { %410 = vmatpush.msrb.mxu3 %v183_v61  ;;  %433 = vmatpush.msra.mxu0 %v202_v14  ;;  %v215_v61 = vld [vmem:[#allocation7 + $0x4c8] sm:$0xff]  ;;  %v205_v14 = vld [vmem:[#allocation7 + $0x478] sm:$0xff] }
  0x4c   :  { %368 = vmatpush.msrb.mxu1 %v128_v47  ;;  %391 = vmatpush.msrb.mxu2 %v144_v48 }
  0x4d   :  { %411 = vmatpush.msrb.mxu3 %v182_v62  ;;  %434 = vmatpush.msra.mxu0 %v201_v15  ;;  %v214_v62 = vld [vmem:[#allocation7 + $0x4c0] sm:$0xff]  ;;  %v204_v15 = vld [vmem:[#allocation7 + $0x470] sm:$0xff] }
  0x4e   :  { %369 = vmatpush.msrb.mxu1 %v127_v49  ;;  %392 = vmatpush.msrb.mxu2 %v143_v50  ;;  %v190_v49 = vld [vmem:[#allocation7 + $0x400] sm:$0xff] }
  0x4f   :  { %412 = vmatpush.msrb.mxu3 %v181_v63  ;;  %435 = vmatpush.msra.mxu0 %v200_v18  ;;  %v213_v63 = vld [vmem:[#allocation7 + $0x4b8] sm:$0xff] }
  0x50   :  { %370 = vmatpush.msrb.mxu1 %v126_v51  ;;  %393 = vmatpush.msrb.mxu2 %v142_v52 }
  0x51   :  { %351 = vmatmul.f32.gmra.mxu0 %v228_v53  ;;  %371 = vmatmul.f32.vlgmr.msrb.gmra.mxu1 %v223_v54 }
  0x52   :  { %394 = vmatmul.f32.vlgmr.msrb.gmra.mxu2 %v224_v55  ;;  %413 = vmatpush.msrb.mxu3 %v180_v0  ;;  %v189_v55 = vld [vmem:[#allocation7 + $0x3f8] sm:$0xff]  ;;  %v212_v0 = vld [vmem:[#allocation7 + $0x4b0] sm:$0xff] }
  0x53   :  { %436 = vmatpush.msra.mxu0 %v199_v19  ;;  %458 = vmatpush.msra.mxu1 %v218_v58 }
  0x54   :  { %414 = vmatpush.msrb.mxu3 %v179_v1  ;;  %505 = vmatpush.msra.mxu2 %v218_v58  ;;  %v211_v1 = vld [vmem:[#allocation7 + $0x4a8] sm:$0xff] }
  0x55   :  { %437 = vmatpush.msra.mxu0 %v198_v22  ;;  %459 = vmatpush.msra.mxu1 %v217_v59 }
  0x56   :  { %415 = vmatpush.msrb.mxu3 %v178_v2  ;;  %506 = vmatpush.msra.mxu2 %v217_v59  ;;  %v210_v2 = vld [vmem:[#allocation7 + $0x4a0] sm:$0xff] }
  0x57   :  { %438 = vmatpush.msra.mxu0 %v197_v23  ;;  %460 = vmatpush.msra.mxu1 %v216_v60 }
  0x58   :  { %416 = vmatpush.msrb.mxu3 %v177_v3  ;;  %507 = vmatpush.msra.mxu2 %v216_v60  ;;  %v406_v3 = vperm.slane %v676_v31, 1 }
  0x59   :  { %374 = vmatmul.f32.gmra.mxu1 %v229_v56  ;;  %439 = vmatpush.msra.mxu0 %v196_v28  ;;  %v188_v56 = vld [vmem:[#allocation7 + $0x3f0] sm:$0xff] }
  0x5a   :  { %397 = vmatmul.f32.gmra.mxu2 %v230_v57  ;;  %417 = vmatpush.msrb.mxu3 %v176_v4  ;;  %v187_v57 = vld [vmem:[#allocation7 + $0x3e8] sm:$0xff]  ;;  %v209_v4 = vld [vmem:[#allocation7 + $0x498] sm:$0xff] }
  0x5b   :  { %440 = vmatpush.msra.mxu0 %v195_v30  ;;  %461 = vmatpush.msra.mxu1 %v215_v61 }
  0x5c   :  { %418 = vmatpush.msrb.mxu3 %v175_v5  ;;  %508 = vmatpush.msra.mxu2 %v215_v61  ;;  %v208_v5 = vld [vmem:[#allocation7 + $0x490] sm:$0xff] }
  0x5d   :  { %441 = vmatpush.msra.mxu0 %v194_v34  ;;  %462 = vmatpush.msra.mxu1 %v214_v62 }
  0x5e   :  { %419 = vmatpush.msrb.mxu3 %v174_v6  ;;  %509 = vmatpush.msra.mxu2 %v214_v62 }
  0x5f   :  { %442 = vmatpush.msra.mxu0 %v193_v38  ;;  %463 = vmatpush.msra.mxu1 %v213_v63 }
  0x60   :  { %420 = vmatpush.msrb.mxu3 %v173_v7  ;;  %510 = vmatpush.msra.mxu2 %v213_v63 }
  0x61   :  { %443 = vmatpush.msra.mxu0 %v192_v42  ;;  %464 = vmatpush.msra.mxu1 %v212_v0 }
  0x62   :  { %421 = vmatpush.msrb.mxu3 %v172_v8  ;;  %511 = vmatpush.msra.mxu2 %v212_v0  ;;  %v207_v8 = vld [vmem:[#allocation7 + $0x488] sm:$0xff] }
  0x63   :  { %444 = vmatpush.msra.mxu0 %v191_v45  ;;  %465 = vmatpush.msra.mxu1 %v211_v1 }
  0x64   :  { %422 = vmatpush.msrb.mxu3 %v171_v10  ;;  %512 = vmatpush.msra.mxu2 %v211_v1  ;;  %v206_v10 = vld [vmem:[#allocation7 + $0x480] sm:$0xff] }
  0x65   :  { %445 = vmatpush.msra.mxu0 %v190_v49  ;;  %466 = vmatpush.msra.mxu1 %v210_v2 }
  0x66   :  { %513 = vmatpush.msra.mxu2 %v210_v2 }
  0x67   :  { %446 = vmatpush.msra.mxu0 %v189_v55  ;;  %467 = vmatpush.msra.mxu1 %v209_v4 }
  0x68   :  { %514 = vmatpush.msra.mxu2 %v209_v4 }
  0x69   :  { %447 = vmatpush.msra.mxu0 %v188_v56  ;;  %468 = vmatpush.msra.mxu1 %v208_v5 }
  0x6a   :  { %515 = vmatpush.msra.mxu2 %v208_v5 }
  0x6b   :  { %448 = vmatpush.msra.mxu0 %v187_v57  ;;  %469 = vmatpush.msra.mxu1 %v207_v8 }
  0x6c   :  { %516 = vmatpush.msra.mxu2 %v207_v8 }
  0x6d   :  { %470 = vmatpush.msra.mxu1 %v206_v10 }
  0x6e   :  { %517 = vmatpush.msra.mxu2 %v206_v10 }
  0x6f   :  { %471 = vmatpush.msra.mxu1 %v205_v14 }
  0x70   :  { %518 = vmatpush.msra.mxu2 %v205_v14 }
  0x71   :  { %472 = vmatpush.msra.mxu1 %v204_v15 }
  0x72   :  { %519 = vmatpush.msra.mxu2 %v204_v15 }
  0xb0   :  { %v257_v9 = vpop.f32.mrf.mxu0 }
  0xb9   :  { %v280_v11 = vpop.f32.mrf.mxu1 }
  0xba   :  { %v281_v17 = vadd.f32 %v280_v11, %v257_v9 }
  0xbb   :  { %v260_v12 = vpop.f32.mrf.mxu0 }
  0xbc   :  { %v326_v20 = vpop.f32.mrf.mxu3 }
  0xbe   :  { %v303_v13 = vpop.f32.mrf.mxu2 }
  0xbf   :  { %v304_v21 = vadd.f32 %v303_v13, %v281_v17  ;;  %v432_v17 = vperm.slane %v676_v31, 2 }
  0xc1   :  { %v283_v16 = vpop.f32.mrf.mxu1  ;;  %v327_v26 = vadd.f32 %v326_v20, %v304_v21 }
  0xc2   :  { %v284_v27 = vadd.f32 %v283_v16, %v260_v12  ;;  %v203_v16 = vld [vmem:[#allocation7 + $0x468] sm:$0xff] }
  0xc3   :  { %473 = vmatpush.msra.mxu1 %v203_v16  ;;  %520 = vmatpush.msra.mxu2 %v203_v16 }
  0xc5   :  { %v329_v35 = vpop.f32.mrf.mxu3 }
  0xc6   :  { %v349_v24 = vpop.f32.mrf.mxu0 }
  0xc7   :  { %v350_v32 = vadd.f32 %v349_v24, %v327_v26 }
  0xca   :  { %v306_v25 = vpop.f32.mrf.mxu2 }
  0xcb   :  { %v307_v33 = vadd.f32 %v306_v25, %v284_v27 }
  0xcd   :  { %v330_v40 = vadd.f32 %v329_v35, %v307_v33 }
  0xce   :  { %v372_v29 = vpop.f32.mrf.mxu1  ;;  %v352_v43 = vpop.f32.mrf.mxu0 }
  0xcf   :  { %v373_v36 = vadd.f32 %v372_v29, %v350_v32  ;;  %v353_v47 = vadd.f32 %v352_v43, %v330_v40 }
  0xd5   :  { %v395_v39 = vpop.f32.mrf.mxu2 }
  0xd6   :  { %v396_v41 = vadd.f32 %v395_v39, %v373_v36  ;;  %v375_v46 = vpop.f32.mrf.mxu1 }
  0xd7   :  { %v376_v50 = vadd.f32 %v375_v46, %v353_v47 }
  0xd8   :  { %v402_v44 = vadd.f32 %v401_v37, %v396_v41 }
  0xda   :  { %v404_v48 = vmax.f32 %v402_v44, 0.0 }
  0xdc   :  { %423 = vmatmul.f32.vlgmr.msrb.gmra.mxu3 %v404_v48 }
  0xdd   :  { %v398_v51 = vpop.f32.mrf.mxu2 }
  0xde   :  { %v399_v52 = vadd.f32 %v398_v51, %v376_v50 }
  0xe0   :  { %v403_v53 = vadd.f32 %v401_v37, %v399_v52 }
  0xe2   :  { %v405_v54 = vmax.f32 %v403_v53, 0.0 }
  0xe4   :  { %426 = vmatmul.f32.gmra.mxu3 %v405_v54 }
 0x15f   :  { %v424_v6 = vpop.f32.mrf.mxu3 }
 0x160   :  { %v425_v7 = vadd.f32 %v424_v6, %v406_v3 }
 0x162   :  { %v430_v9 = vmax.f32 %v425_v7, 0.0 }
 0x164   :  { %449 = vmatmul.f32.vlgmr.msra.gmra.mxu0 %v430_v9 }
 0x167   :  { %v427_v11 = vpop.f32.mrf.mxu3 }
 0x168   :  { %v428_v12 = vadd.f32 %v427_v11, %v406_v3 }
 0x16a   :  { %v431_v13 = vmax.f32 %v428_v12, 0.0 }
 0x16c   :  { %452 = vmatmul.f32.gmra.mxu0 %v431_v13 }
 0x1e1   :  { %v450_v18 = vpop.f32.mrf.mxu0 }
 0x1e2   :  { %v451_v19 = vadd.f32 %v450_v18, %v432_v17 }
 0x1e4   :  { %v456_v20 = vmax.f32 %v451_v19, 0.0 }
 0x1e6   :  { %474 = vmatmul.f32.vlgmr.msra.gmra.mxu1 %v456_v20 }
 0x1e9   :  { %v453_v21 = vpop.f32.mrf.mxu0 }
 0x1ea   :  { %v454_v22 = vadd.f32 %v453_v21, %v432_v17 }
 0x1ec   :  { %v457_v23 = vmax.f32 %v454_v22, 0.0 }
 0x1ee   :  { %477 = vmatmul.f32.vlgmr.msra.gmra.mxu2 %v457_v23 }
 0x263   :  { %v475_v24 = vpop.f32.mrf.mxu1 }
 0x264   :  { %481 = vst [vmem:[#allocation8] sm:$0xff] %v475_v24 }
 0x271   :  { %v478_v25 = vpop.f32.mrf.mxu2 }
 0x272   :  { %482 = vst [vmem:[#allocation8 + $0x8] sm:$0xff] %v478_v25 }
 0x273   :  { %495 = dma.vmem_to_hbm [thread:$0]  %s488_s29, 256, %s490_s5, [#allocation4], %s632_s20, %s632_s20, %s633_s21  }
 0x274   :  { %629 = dma.done.wait [#allocation4], 256  }
 0x275   :  { %630 = vsyncadd [#allocation4], 4294967040 }
 0x276   :  { %500 = vsyncpa [#allocation3], 1 }
 0x277   :  { %501 = vsyncpa [#allocation6], 1 }
 0x278   :  { %502 = vsyncpa [#allocation4], 1 }

</bundles_post_ra>
